<compile_context>
chip_gen: v7x
topology: tpu7x:2x2x1
jax: 0.10.0
libtpu: 0.0.40
codegen_flags: <defaults>
</compile_context>

<pallas_src>
import jax
import jax.numpy as jnp
from jax.experimental import pallas as pl
from jax.experimental.pallas import tpu as pltpu


def _critic_kernel(xT_ref, w1_ref, b1_ref, w2_ref, b2_ref, w3_ref, b3_ref,
                   out_ref):
    x = xT_ref[...]                                    # (S, TB) f32
    S = x.shape[0]

    # ---- Layer 1: Linear(S -> 128) + ReLU on the VPU (K=4 is MXU-hostile).
    # h1[j, n] = sum_k w1[j, k] * x[k, n] + b1[j]   (bias folded into k=0 FMA)
    h1 = w1_ref[:, 0:1] * x[0:1, :] + b1_ref[...]      # (128, TB)
    for k in range(1, S):                              # S is tiny & static
        h1 = h1 + w1_ref[:, k:k + 1] * x[k:k + 1, :]
    h1 = jnp.maximum(h1, 0.0)

    # ---- Layer 2: Linear(128 -> 256) + ReLU on the MXU (f32 accumulate).
    h2 = jnp.dot(w2_ref[...], h1.astype(w2_ref.dtype),
                 preferred_element_type=jnp.float32)   # (256, TB) f32
    h2 = jnp.maximum(h2 + b2_ref[...], 0.0)

    # ---- Layer 3: Linear(256 -> 1): VPU multiply + XLU sublane reduce.
    # Result (1, TB) is lane-dense.
    v = jnp.sum(h2 * w3_ref[...], axis=0, keepdims=True) + b3_ref[0, 0]
    out_ref[...] = v.astype(out_ref.dtype)


def critic_forward(x, params, *, tile_b=None, compute_dtype=jnp.float32):
    """x: (B, state_size) float32 -> value: (B, 1) float32."""
    w1, b1, w2, b2, w3, b3 = params          # PyTorch nn.Linear layouts
    B, S = x.shape
    H1 = w1.shape[0]                         # 128
    H2 = w2.shape[0]                         # 256

    if tile_b is None:
        # Multiple of 128 lanes; bigger tiles for bigger batches (fewer grid
        # steps), capped at 1024 so x/out tiles stay a few KiB each.
        tile_b = min(1024, max(128, -(-B // 128) * 128))
    assert tile_b % 128 == 0, "batch tile must be a multiple of 128 (lanes)"

    num_tiles = pl.cdiv(B, tile_b)
    B_pad = num_tiles * tile_b

    # Transposed, lane-dense layout: batch on the lane (last) axis.
    xT = jnp.pad(x.T, ((0, 0), (0, B_pad - B)))        # (S, B_pad)

    w2c = w2.astype(compute_dtype)                     # MXU operand dtype
    b1c = b1.reshape(H1, 1)
    b2c = b2.reshape(H2, 1)
    w3c = w3.reshape(H2, 1)                            # (1, 256) -> (256, 1)
    b3c = b3.reshape(1, 1)                             # SMEM scalar

    flops = 2 * B_pad * (S * H1 + H1 * H2 + H2)
    bytes_accessed = (
        S * B_pad * 4 + B_pad * 4                      # x in, value out
        + (H1 * S + H1 + H2 + H2 + 1) * 4              # f32 params
        + H2 * H1 * jnp.dtype(compute_dtype).itemsize) # w2

    out = pl.pallas_call(
        _critic_kernel,
        out_shape=jax.ShapeDtypeStruct((1, B_pad), jnp.float32),
        grid=(num_tiles,),
        in_specs=[
            pl.BlockSpec((S, tile_b), lambda i: (0, i)),   # x tile (streamed)
            pl.BlockSpec((H1, S), lambda i: (0, 0)),       # w1  (resident)
            pl.BlockSpec((H1, 1), lambda i: (0, 0)),       # b1
            pl.BlockSpec((H2, H1), lambda i: (0, 0)),      # w2
            pl.BlockSpec((H2, 1), lambda i: (0, 0)),       # b2
            pl.BlockSpec((H2, 1), lambda i: (0, 0)),       # w3
            pl.BlockSpec(memory_space=pltpu.SMEM),         # b3 scalar
        ],
        out_specs=pl.BlockSpec((1, tile_b), lambda i: (0, i)),
        compiler_params=pltpu.CompilerParams(
            dimension_semantics=("parallel",)),
        cost_estimate=pl.CostEstimate(
            flops=flops, transcendentals=0, bytes_accessed=bytes_accessed),
    )(xT, w1, b1c, w2c, b2c, w3c, b3c)

    return out[0, :B].reshape(B, 1)


def init_critic_params(key, state_size):
    """PyTorch nn.Linear default init (uniform +-1/sqrt(fan_in)), PyTorch
    (out_features, in_features) weight layout."""
    dims = [(state_size, 128), (128, 256), (256, 1)]
    params = []
    for i, (fan_in, fan_out) in enumerate(dims):
        kw, kb = jax.random.split(jax.random.fold_in(key, i))
        bound = 1.0 / (fan_in ** 0.5)
        w = jax.random.uniform(kw, (fan_out, fan_in), jnp.float32,
                               minval=-bound, maxval=bound)
        b = jax.random.uniform(kb, (fan_out,), jnp.float32,
                               minval=-bound, maxval=bound)
        params += [w, b]
    return tuple(params)


def critic_reference(x, params):
    w1, b1, w2, b2, w3, b3 = params
    hp = jax.lax.Precision.HIGHEST
    h1 = jnp.maximum(jnp.dot(x, w1.T, precision=hp) + b1, 0.0)
    h2 = jnp.maximum(jnp.dot(h1, w2.T, precision=hp) + b2, 0.0)
    return jnp.dot(h2, w3.T, precision=hp) + b3


if __name__ == "__main__":
    key = jax.random.PRNGKey(0)
    kx, kp = jax.random.split(key)

    batch = 8
    state_size = 4          # len(env.observation_space.spaces) stand-in

    x = jax.random.normal(kx, (batch, state_size), jnp.float32)
    params = init_critic_params(kp, state_size)

    ref = critic_reference(x, params)

    # f32 path (matches the PyTorch module's numerics).
    value = jax.block_until_ready(critic_forward(x, params))
    assert value.shape == (batch, 1)
    err = jnp.max(jnp.abs(value - ref))
    assert jnp.allclose(value, ref, atol=1e-4, rtol=1e-4), \
        f"f32 mismatch: max abs err {err}"

    # bf16-operand / f32-accumulate MXU path.
    value_bf16 = jax.block_until_ready(
        critic_forward(x, params, compute_dtype=jnp.bfloat16))
    err16 = jnp.max(jnp.abs(value_bf16 - ref))
    assert jnp.allclose(value_bf16, ref, atol=3e-2, rtol=3e-2), \
        f"bf16 mismatch: max abs err {err16}"

    # Multi-tile path (exercises the streamed grid + resident weights).
    xl = jax.random.normal(kx, (300, state_size), jnp.float32)
    refl = critic_reference(xl, params)
    vall = jax.block_until_ready(critic_forward(xl, params, tile_b=128))
    assert vall.shape == (300, 1)
    assert jnp.allclose(vall, refl, atol=1e-4, rtol=1e-4), "multi-tile mismatch"

    print("KERNEL_OK")
</pallas_src>

<mosaic_0001>
module attributes {stable_mosaic.version = 11 : i64} {
  func.func @_critic_kernel(%arg0: i32, %arg1: memref<4x128xf32, #tpu.memory_space<vmem>>, %arg2: memref<128x4xf32, #tpu.memory_space<vmem>>, %arg3: memref<128x1xf32, #tpu.memory_space<vmem>>, %arg4: memref<256x128xf32, #tpu.memory_space<vmem>>, %arg5: memref<256x1xf32, #tpu.memory_space<vmem>>, %arg6: memref<256x1xf32, #tpu.memory_space<vmem>>, %arg7: memref<1x1xf32, #tpu.memory_space<smem>>, %arg8: memref<1x128xf32, #tpu.memory_space<vmem>>) attributes {dimension_semantics = [#tpu.dimension_semantics<parallel>], iteration_bounds = array<i64: 1>, scalar_prefetch = 0 : i64, scratch_operands = 0 : i64, tpu.core_type = #tpu.core_type<tc>, window_params = [{transform_indices = @transform_0, window_bounds = array<i64: 4, 128>}, {pipeline_mode = #tpu.pipeline_mode<synchronous>, transform_indices = @transform_1, window_bounds = array<i64: 128, 4>}, {pipeline_mode = #tpu.pipeline_mode<synchronous>, transform_indices = @transform_2, window_bounds = array<i64: 128, 1>}, {pipeline_mode = #tpu.pipeline_mode<synchronous>, transform_indices = @transform_3, window_bounds = array<i64: 256, 128>}, {pipeline_mode = #tpu.pipeline_mode<synchronous>, transform_indices = @transform_4, window_bounds = array<i64: 256, 1>}, {pipeline_mode = #tpu.pipeline_mode<synchronous>, transform_indices = @transform_5, window_bounds = array<i64: 256, 1>}, {transform_indices = @transform_6, window_bounds = array<i64: 1, 1>}, {transform_indices = @transform_7, window_bounds = array<i64: 1, 128>}]} {
    %c0 = arith.constant 0 : index
    %c0_0 = arith.constant 0 : index
    %0 = vector.load %arg1[%c0, %c0_0] : memref<4x128xf32, #tpu.memory_space<vmem>>, vector<4x128xf32>
    %c0_1 = arith.constant 0 : index
    %c0_2 = arith.constant 0 : index
    %1 = vector.load %arg2[%c0_1, %c0_2] : memref<128x4xf32, #tpu.memory_space<vmem>>, vector<128x1xf32>
    %2 = vector.extract_strided_slice %0 {offsets = [0, 0], sizes = [1, 128], strides = [1, 1]} : vector<4x128xf32> to vector<1x128xf32>
    %3 = vector.broadcast %1 : vector<128x1xf32> to vector<128x128xf32>
    %4 = vector.broadcast %2 : vector<1x128xf32> to vector<128x128xf32>
    %5 = arith.mulf %3, %4 : vector<128x128xf32>
    %c0_3 = arith.constant 0 : index
    %c0_4 = arith.constant 0 : index
    %6 = vector.load %arg3[%c0_3, %c0_4] : memref<128x1xf32, #tpu.memory_space<vmem>>, vector<128x1xf32>
    %7 = vector.broadcast %6 : vector<128x1xf32> to vector<128x128xf32>
    %8 = arith.addf %5, %7 : vector<128x128xf32>
    %c0_5 = arith.constant 0 : index
    %c1 = arith.constant 1 : index
    %9 = vector.load %arg2[%c0_5, %c1] : memref<128x4xf32, #tpu.memory_space<vmem>>, vector<128x1xf32>
    %10 = vector.extract_strided_slice %0 {offsets = [1, 0], sizes = [1, 128], strides = [1, 1]} : vector<4x128xf32> to vector<1x128xf32>
    %11 = vector.broadcast %9 : vector<128x1xf32> to vector<128x128xf32>
    %12 = vector.broadcast %10 : vector<1x128xf32> to vector<128x128xf32>
    %13 = arith.mulf %11, %12 : vector<128x128xf32>
    %14 = arith.addf %8, %13 : vector<128x128xf32>
    %c0_6 = arith.constant 0 : index
    %c2 = arith.constant 2 : index
    %15 = vector.load %arg2[%c0_6, %c2] : memref<128x4xf32, #tpu.memory_space<vmem>>, vector<128x1xf32>
    %16 = vector.extract_strided_slice %0 {offsets = [2, 0], sizes = [1, 128], strides = [1, 1]} : vector<4x128xf32> to vector<1x128xf32>
    %17 = vector.broadcast %15 : vector<128x1xf32> to vector<128x128xf32>
    %18 = vector.broadcast %16 : vector<1x128xf32> to vector<128x128xf32>
    %19 = arith.mulf %17, %18 : vector<128x128xf32>
    %20 = arith.addf %14, %19 : vector<128x128xf32>
    %c0_7 = arith.constant 0 : index
    %c3 = arith.constant 3 : index
    %21 = vector.load %arg2[%c0_7, %c3] : memref<128x4xf32, #tpu.memory_space<vmem>>, vector<128x1xf32>
    %22 = vector.extract_strided_slice %0 {offsets = [3, 0], sizes = [1, 128], strides = [1, 1]} : vector<4x128xf32> to vector<1x128xf32>
    %23 = vector.broadcast %21 : vector<128x1xf32> to vector<128x128xf32>
    %24 = vector.broadcast %22 : vector<1x128xf32> to vector<128x128xf32>
    %25 = arith.mulf %23, %24 : vector<128x128xf32>
    %26 = arith.addf %20, %25 : vector<128x128xf32>
    %cst = arith.constant 0.000000e+00 : f32
    %27 = vector.broadcast %cst : f32 to vector<128x128xf32>
    %28 = arith.maximumf %26, %27 : vector<128x128xf32>
    %c0_8 = arith.constant 0 : index
    %c0_9 = arith.constant 0 : index
    %29 = vector.load %arg4[%c0_8, %c0_9] : memref<256x128xf32, #tpu.memory_space<vmem>>, vector<256x128xf32>
    %cst_10 = arith.constant dense<0.000000e+00> : vector<256x128xf32>
    %30 = tpu.matmul %29, %28, %cst_10 {dimension_numbers = #tpu.dot_dimension_numbers<[1], [0], [0], [1], [0, 0, 1, 1], [], []>} : vector<256x128xf32>, vector<128x128xf32>, vector<256x128xf32> -> vector<256x128xf32>
    %c0_11 = arith.constant 0 : index
    %c0_12 = arith.constant 0 : index
    %31 = vector.load %arg5[%c0_11, %c0_12] : memref<256x1xf32, #tpu.memory_space<vmem>>, vector<256x1xf32>
    %32 = vector.broadcast %31 : vector<256x1xf32> to vector<256x128xf32>
    %33 = arith.addf %30, %32 : vector<256x128xf32>
    %cst_13 = arith.constant 0.000000e+00 : f32
    %34 = vector.broadcast %cst_13 : f32 to vector<256x128xf32>
    %35 = arith.maximumf %33, %34 : vector<256x128xf32>
    %c0_14 = arith.constant 0 : index
    %c0_15 = arith.constant 0 : index
    %36 = vector.load %arg6[%c0_14, %c0_15] : memref<256x1xf32, #tpu.memory_space<vmem>>, vector<256x1xf32>
    %37 = vector.broadcast %36 : vector<256x1xf32> to vector<256x128xf32>
    %38 = arith.mulf %35, %37 : vector<256x128xf32>
    %cst_16 = arith.constant dense<0.000000e+00> : vector<128xf32>
    %39 = vector.multi_reduction <add>, %38, %cst_16 [0] : vector<256x128xf32> to vector<128xf32>
    %40 = vector.shape_cast %39 : vector<128xf32> to vector<1x128xf32>
    %c0_17 = arith.constant 0 : index
    %c0_18 = arith.constant 0 : index
    %41 = memref.load %arg7[%c0_17, %c0_18] : memref<1x1xf32, #tpu.memory_space<smem>>
    %42 = vector.broadcast %41 : f32 to vector<1x128xf32>
    %43 = arith.addf %40, %42 : vector<1x128xf32>
    %c0_19 = arith.constant 0 : index
    %c0_20 = arith.constant 0 : index
    %44 = vector.load %arg8[%c0_19, %c0_20] : memref<1x128xf32, #tpu.memory_space<vmem>>, vector<1x128xf32>
    tpu.vector_store %arg8[%c0_19, %c0_20], %43 {strides = array<i32>} : memref<1x128xf32, #tpu.memory_space<vmem>>, vector<1x128xf32>,
    return
  }
  func.func @transform_0(%arg0: i32) -> (i32, i32) {
    %c0_i32 = arith.constant 0 : i32
    %c0_i32_0 = arith.constant 0 : i32
    return %c0_i32, %arg0 : i32, i32
  }
  func.func @transform_1(%arg0: i32) -> (i32, i32) {
    %c0_i32 = arith.constant 0 : i32
    %c0_i32_0 = arith.constant 0 : i32
    %c0_i32_1 = arith.constant 0 : i32
    return %c0_i32, %c0_i32_0 : i32, i32
  }
  func.func @transform_2(%arg0: i32) -> (i32, i32) {
    %c0_i32 = arith.constant 0 : i32
    %c0_i32_0 = arith.constant 0 : i32
    %c0_i32_1 = arith.constant 0 : i32
    return %c0_i32, %c0_i32_0 : i32, i32
  }
  func.func @transform_3(%arg0: i32) -> (i32, i32) {
    %c0_i32 = arith.constant 0 : i32
    %c0_i32_0 = arith.constant 0 : i32
    %c0_i32_1 = arith.constant 0 : i32
    return %c0_i32, %c0_i32_0 : i32, i32
  }
  func.func @transform_4(%arg0: i32) -> (i32, i32) {
    %c0_i32 = arith.constant 0 : i32
    %c0_i32_0 = arith.constant 0 : i32
    %c0_i32_1 = arith.constant 0 : i32
    return %c0_i32, %c0_i32_0 : i32, i32
  }
  func.func @transform_5(%arg0: i32) -> (i32, i32) {
    %c0_i32 = arith.constant 0 : i32
    %c0_i32_0 = arith.constant 0 : i32
    %c0_i32_1 = arith.constant 0 : i32
    return %c0_i32, %c0_i32_0 : i32, i32
  }
  func.func @transform_6(%arg0: i32) -> (i32, i32) {
    %c0_i32 = arith.constant 0 : i32
    %c0_i32_0 = arith.constant 0 : i32
    %c0_i32_1 = arith.constant 0 : i32
    return %c0_i32, %c0_i32_0 : i32, i32
  }
  func.func @transform_7(%arg0: i32) -> (i32, i32) {
    %c0_i32 = arith.constant 0 : i32
    %c0_i32_0 = arith.constant 0 : i32
    return %c0_i32, %arg0 : i32, i32
  }
}

</mosaic_0001>

<bundles_post_ra>
// kernel: tpu_custom_call.1
= control target key start
LH: loop header
LB: loop body
LE: loop exit
PB: predicated region body
PF: predicated region fallthrough
CT: control target
= control target key end

     0   :  { %v1566_v2 = vmov 0   ;;  %s2506_s0 = inlined_call_operand.vmem [shape: f32[4,128], index: 0, kind: input, shape index: {}]   ;;  %s2507_s1 = inlined_call_operand.vmem [shape: f32[128,4], index: 1, kind: input, shape index: {}]   ;;  %s2508_s2 = inlined_call_operand.vmem [shape: f32[128,1], index: 2, kind: input, shape index: {}]   ;;  %s2509_s3 = inlined_call_operand.vmem [shape: f32[256,128], index: 3, kind: input, shape index: {}]   ;;  %s2510_s4 = inlined_call_operand.vmem [shape: f32[256,1], index: 4, kind: input, shape index: {}]   ;;  %s2511_s5 = inlined_call_operand.vmem [shape: f32[256,1], index: 5, kind: input, shape index: {}]   ;;  %s2512_s6 = inlined_call_operand.<no memory space> [shape: f32[1,1], index: 6, kind: input, shape index: {}]   ;;  %s2513_s7 = inlined_call_operand.hbm [shape: f32[1,128], index: 7, kind: output, shape index: {}]  }
   0x1   :  { %v1614_v0 = vld [vmem:[%s2507_s1 + $0x10] sm:$0xff]  ;;  %v1619_v1 = vld [vmem:[%s2507_s1] sm:$0xff]  ;;  %1515 = vset.pattern.permute.xlu1 %v1566_v2  ;;  %1514 = vset.pattern.permute.xlu0 %v1566_v2  ;;  %v1628_v3 = vld [vmem:[%s2507_s1 + $0x18] sm:$0xff] }
   0x2   :  { %57 = vperm.xlu1 %1515, %v1614_v0   ;;  %47 = vperm.xlu0 %1514, %v1619_v1   ;;  %v1633_v4 = vld [vmem:[%s2507_s1 + $0x8] sm:$0xff]  ;;  %v1645_v6 = vld [vmem:[%s2507_s1 + $0x20] sm:$0xff]  ;;  %v1652_v7 = vld [vmem:[%s2507_s1 + $0x38] sm:$0xff] }
   0x3   :  { %v1640_v5 = vld [vmem:[%s2507_s1 + $0x28] sm:$0xff]  ;;  %v1657_v8 = vld [vmem:[%s2507_s1 + $0x30] sm:$0xff] }
   0x6   :  { %62 = vperm.xlu1 %1515, %v1628_v3   ;;  %52 = vperm.xlu0 %1514, %v1633_v4  }
   0xa   :  { %72 = vperm.xlu1 %1515, %v1640_v5   ;;  %67 = vperm.xlu0 %1514, %v1645_v6  }
   0xb   :  { %13 = vsyncpa [#allocation4], 0  ;;  %v1664_v9 = vld [vmem:[%s2507_s1 + $0x48] sm:$0xff]  ;;  %v1669_v10 = vld [vmem:[%s2507_s1 + $0x40] sm:$0xff]  ;;  %v1567_v33 = vmov 1   ;;  %v1568_v34 = vmov 2  }
   0xc   :  { %v1676_v11 = vld [vmem:[%s2507_s1 + $0x58] sm:$0xff]  ;;  %v1681_v12 = vld [vmem:[%s2507_s1 + $0x50] sm:$0xff]  ;;  %v1688_v13 = vld [vmem:[%s2507_s1 + $0x68] sm:$0xff]  ;;  %v1569_v35 = vmov 3   ;;  %s1570_s25 = smov [#allocation3]  }
   0xd   :  { %v1693_v14 = vld [vmem:[%s2507_s1 + $0x60] sm:$0xff]  ;;  %v1700_v15 = vld [vmem:[%s2507_s1 + $0x78] sm:$0xff]  ;;  %v1705_v16 = vld [vmem:[%s2507_s1 + $0x70] sm:$0xff]  ;;  %s1325_s26 = sshll.u32 %s1570_s25, 4  ;;  %s1326_s26 = int_to_ptr.vmem [resolvable:$true] %s1325_s26 }
   0xe   :  { %82 = vperm.xlu1 %1515, %v1652_v7   ;;  %77 = vperm.xlu0 %1514, %v1657_v8   ;;  %v146_v17 = vld [vmem:[%s2508_s2 + $0x8] sm:$0xff]  ;;  %v145_v18 = vld [vmem:[%s2508_s2] sm:$0xff]  ;;  %v148_v19 = vld [vmem:[%s2508_s2 + $0x18] sm:$0xff]  ;;  %s1542_s27 = scalar_lea.vmem %s1326_s26, 16  ;;  %p1547_p1 = scmp.lt.s32.totalorder %s1326_s26, %s1326_s26 }
   0xf   :  { %v147_v20 = vld [vmem:[%s2508_s2 + $0x10] sm:$0xff]  ;;  %v150_v21 = vld [vmem:[%s2508_s2 + $0x28] sm:$0xff]  ;;  %v149_v22 = vld [vmem:[%s2508_s2 + $0x20] sm:$0xff]  ;;  %p1543_p0 = scmp.ne.s32.totalorder %s1326_s26, %s1542_s27 }
  0x10   :  { %v152_v23 = vld [vmem:[%s2508_s2 + $0x38] sm:$0xff]  ;;  %v151_v24 = vld [vmem:[%s2508_s2 + $0x30] sm:$0xff]  ;;  %v154_v25 = vld [vmem:[%s2508_s2 + $0x48] sm:$0xff] }
  0x11   :  { %v153_v26 = vld [vmem:[%s2508_s2 + $0x40] sm:$0xff]  ;;  %v156_v27 = vld [vmem:[%s2508_s2 + $0x58] sm:$0xff]  ;;  %v155_v28 = vld [vmem:[%s2508_s2 + $0x50] sm:$0xff] }
  0x12   :  { %92 = vperm.xlu1 %1515, %v1664_v9   ;;  %87 = vperm.xlu0 %1514, %v1669_v10   ;;  %v158_v29 = vld [vmem:[%s2508_s2 + $0x68] sm:$0xff]  ;;  %v157_v30 = vld [vmem:[%s2508_s2 + $0x60] sm:$0xff]  ;;  %v160_v31 = vld [vmem:[%s2508_s2 + $0x78] sm:$0xff] }
  0x13   :  { %v159_v32 = vld [vmem:[%s2508_s2 + $0x70] sm:$0xff]  ;;  %v605_v42 = vld [vmem:[%s2510_s4] sm:$0xff]  ;;  %v608_v45 = vld [vmem:[%s2510_s4 + $0x18] sm:$0xff] }
  0x14   :  { %v610_v48 = vld [vmem:[%s2510_s4 + $0x28] sm:$0xff]  ;;  %v612_v51 = vld [vmem:[%s2510_s4 + $0x38] sm:$0xff] }
  0x15   :  { %v614_v54 = vld [vmem:[%s2510_s4 + $0x48] sm:$0xff]  ;;  %v616_v57 = vld [vmem:[%s2510_s4 + $0x58] sm:$0xff] }
  0x16   :  { %102 = vperm.xlu1 %1515, %v1676_v11   ;;  %97 = vperm.xlu0 %1514, %v1681_v12   ;;  %v618_v60 = vld [vmem:[%s2510_s4 + $0x68] sm:$0xff]  ;;  %v620_v63 = vld [vmem:[%s2510_s4 + $0x78] sm:$0xff] }
  0x1a   :  { %112 = vperm.xlu1 %1515, %v1688_v13   ;;  %107 = vperm.xlu0 %1514, %v1693_v14  }
  0x1e   :  { %122 = vperm.xlu1 %1515, %v1700_v15   ;;  %117 = vperm.xlu0 %1514, %v1705_v16  }
  0x22   :  { %168 = vperm.xlu1 %1515, %v146_v17   ;;  %163 = vperm.xlu0 %1514, %v145_v18   ;;  %v630_v18 = vld [vmem:[%s2510_s4 + $0xc8] sm:$0xff] }
  0x26   :  { %178 = vperm.xlu1 %1515, %v148_v19   ;;  %173 = vperm.xlu0 %1514, %v147_v20  }
  0x2a   :  { %188 = vperm.xlu1 %1515, %v150_v21   ;;  %183 = vperm.xlu0 %1514, %v149_v22   ;;  %v632_v21 = vld [vmem:[%s2510_s4 + $0xd8] sm:$0xff] }
  0x2e   :  { %198 = vperm.xlu1 %1515, %v152_v23   ;;  %193 = vperm.xlu0 %1514, %v151_v24  }
  0x32   :  { %208 = vperm.xlu1 %1515, %v154_v25   ;;  %203 = vperm.xlu0 %1514, %v153_v26   ;;  %v1057_v26 = vld [vmem:[%s2511_s5 + $0x18] sm:$0xff] }
  0x36   :  { %218 = vperm.xlu1 %1515, %v156_v27   ;;  %213 = vperm.xlu0 %1514, %v155_v28  }
  0x3a   :  { %228 = vperm.xlu1 %1515, %v158_v29   ;;  %223 = vperm.xlu0 %1514, %v157_v30   ;;  %v125_v29 = vlaneseq  ;;  %v606_v30 = vld [vmem:[%s2510_s4 + $0x8] sm:$0xff] }
  0x3e   :  { %238 = vperm.xlu1 %1515, %v160_v31   ;;  %233 = vperm.xlu0 %1514, %v159_v32  }
  0x42   :  { %1517 = vset.pattern.permute.xlu1 %v1567_v33  ;;  %1516 = vset.pattern.permute.xlu0 %v1567_v33 }
  0x43   :  { %262 = vperm.xlu1 %1517, %v1633_v4   ;;  %258 = vperm.xlu0 %1516, %v1619_v1  }
  0x47   :  { %266 = vperm.xlu1 %1517, %v1614_v0   ;;  %270 = vperm.xlu0 %1516, %v1628_v3  }
  0x4b   :  { %274 = vperm.xlu1 %1517, %v1645_v6   ;;  %278 = vperm.xlu0 %1516, %v1640_v5  }
  0x4f   :  { %282 = vperm.xlu1 %1517, %v1657_v8   ;;  %286 = vperm.xlu0 %1516, %v1652_v7  }
  0x53   :  { %290 = vperm.xlu1 %1517, %v1669_v10   ;;  %294 = vperm.xlu0 %1516, %v1664_v9  }
  0x57   :  { %298 = vperm.xlu1 %1517, %v1681_v12   ;;  %1518 = vset.pattern.permute.xlu0 %v1568_v34 }
  0x58   :  { %358 = vperm.xlu0 %1518, %v1619_v1  }
  0x5b   :  { %1519 = vset.pattern.permute.xlu1 %v1568_v34 }
  0x5c   :  { %362 = vperm.xlu1 %1519, %v1633_v4   ;;  %374 = vperm.xlu0 %1518, %v1645_v6  }
  0x60   :  { %1520 = vset.pattern.permute.xlu1 %v1569_v35  ;;  %1523 = vset.pattern.permute.xlu0 %v1569_v35 }
  0x61   :  { %458 = vperm.xlu1 %1520, %v1619_v1   ;;  %462 = vperm.xlu0 %1523, %v1633_v4  }
  0x65   :  { %1521 = vset.pattern.permute.xlu1 %v1568_v34  ;;  %466 = vperm.xlu0 %1523, %v1614_v0  }
  0x66   :  { %366 = vperm.xlu1 %1521, %v1614_v0  }
  0x69   :  { %478 = vperm.xlu0 %1523, %v1640_v5  }
  0x6a   :  { %370 = vperm.xlu1 %1521, %v1628_v3  }
  0x6d   :  { %482 = vperm.xlu0 %1523, %v1657_v8  }
  0x6e   :  { %1522 = vset.pattern.permute.xlu1 %v1569_v35 }
  0x6f   :  { %470 = vperm.xlu1 %1522, %v1628_v3   ;;  %v622_v3 = vld [vmem:[%s2510_s4 + $0x88] sm:$0xff] }
  0x71   :  { %490 = vperm.xlu0 %1523, %v1669_v10  }
  0x73   :  { %1524 = vset.pattern.permute.xlu1 %v1568_v34 }
  0x74   :  { %378 = vperm.xlu1 %1524, %v1640_v5  }
  0x75   :  { %498 = vperm.xlu0 %1523, %v1681_v12  }
  0x78   :  { %1525 = vset.pattern.permute.xlu1 %v1569_v35 }
  0x79   :  { %474 = vperm.xlu1 %1525, %v1645_v6   ;;  %506 = vperm.xlu0 %1523, %v1693_v14   ;;  %v624_v6 = vld [vmem:[%s2510_s4 + $0x98] sm:$0xff] }
  0x7d   :  { %1526 = vset.pattern.permute.xlu1 %v1568_v34  ;;  %1536 = vset.pattern.permute.xlu0 %v1568_v34 }
  0x7e   :  { %382 = vperm.xlu1 %1526, %v1657_v8   ;;  %390 = vperm.xlu0 %1536, %v1669_v10  }
  0x81   :  { %v1798_v36 = vpop.permute.xlu1 %57  ;;  %v1800_v37 = vpop.permute.xlu0 %47 }
  0x82   :  { %386 = vperm.xlu1 %1526, %v1652_v7   ;;  %402 = vperm.xlu0 %1536, %v1676_v11  }
  0x85   :  { %v1804_v38 = vpop.permute.xlu1 %62  ;;  %v1806_v39 = vpop.permute.xlu0 %52 }
  0x86   :  { %1527 = vset.pattern.permute.xlu1 %v1569_v35  ;;  %410 = vperm.xlu0 %1536, %v1688_v13  }
  0x87   :  { %486 = vperm.xlu1 %1527, %v1652_v7  }
  0x89   :  { %v1811_v40 = vpop.permute.xlu1 %72  ;;  %v1813_v41 = vpop.permute.xlu0 %67 }
  0x8a   :  { %418 = vperm.xlu0 %1536, %v1700_v15  }
  0x8b   :  { %1528 = vset.pattern.permute.xlu1 %v1568_v34 }
  0x8c   :  { %394 = vperm.xlu1 %1528, %v1664_v9  }
  0x8d   :  { %v1821_v43 = vpop.permute.xlu1 %82  ;;  %v1823_v44 = vpop.permute.xlu0 %77 }
  0x8e   :  { %1540 = vset.pattern.permute.xlu0 %v1566_v2 }
  0x8f   :  { %639 = vperm.xlu0 %1540, %v605_v42  }
  0x90   :  { %1529 = vset.pattern.permute.xlu1 %v1567_v33 }
  0x91   :  { %v1830_v46 = vpop.permute.xlu1 %92  ;;  %302 = vperm.xlu1 %1529, %v1676_v11   ;;  %v1833_v47 = vpop.permute.xlu0 %87 }
  0x93   :  { %654 = vperm.xlu0 %1540, %v608_v45  }
  0x95   :  { %v1838_v49 = vpop.permute.xlu1 %102  ;;  %1530 = vset.pattern.permute.xlu1 %v1569_v35  ;;  %v1841_v50 = vpop.permute.xlu0 %97 }
  0x96   :  { %494 = vperm.xlu1 %1530, %v1664_v9   ;;  %v626_v9 = vld [vmem:[%s2510_s4 + $0xa8] sm:$0xff] }
  0x97   :  { %664 = vperm.xlu0 %1540, %v610_v48  }
  0x99   :  { %v1847_v52 = vpop.permute.xlu1 %112  ;;  %v1849_v53 = vpop.permute.xlu0 %107 }
  0x9a   :  { %1531 = vset.pattern.permute.xlu1 %v1568_v34 }
  0x9b   :  { %398 = vperm.xlu1 %1531, %v1681_v12   ;;  %674 = vperm.xlu0 %1540, %v612_v51   ;;  %v628_v12 = vld [vmem:[%s2510_s4 + $0xb8] sm:$0xff]  ;;  %v589_v51 = vld [vmem:[%s2509_s3 + $0x80] sm:$0xff] }
  0x9c   :  { %1437 = vmatprep.mubr.f32.mxu1 %v589_v51 }
  0x9d   :  { %v1856_v55 = vpop.permute.xlu1 %122  ;;  %v1858_v56 = vpop.permute.xlu0 %117 }
  0x9f   :  { %1532 = vset.pattern.permute.xlu1 %v1567_v33  ;;  %684 = vperm.xlu0 %1540, %v614_v54   ;;  %v28_v54 = vld [vmem:[%s2506_s0] sm:$0xf] }
  0xa0   :  { %306 = vperm.xlu1 %1532, %v1693_v14  }
  0xa1   :  { %v1865_v58 = vpop.permute.xlu1 %168  ;;  %v1867_v59 = vpop.permute.xlu0 %163 }
  0xa3   :  { %694 = vperm.xlu0 %1540, %v616_v57   ;;  %v609_v57 = vld [vmem:[%s2510_s4 + $0x20] sm:$0xff] }
  0xa4   :  { %310 = vperm.xlu1 %1532, %v1688_v13  }
  0xa5   :  { %v1873_v61 = vpop.permute.xlu1 %178  ;;  %v1875_v62 = vpop.permute.xlu0 %173 }
  0xa7   :  { %704 = vperm.xlu0 %1540, %v618_v60   ;;  %v1063_v60 = vld [vmem:[%s2511_s5 + $0x48] sm:$0xff] }
  0xa8   :  { %1533 = vset.pattern.permute.xlu1 %v1569_v35 }
  0xa9   :  { %v1881_v0 = vpop.permute.xlu1 %188  ;;  %502 = vperm.xlu1 %1533, %v1676_v11   ;;  %v1884_v1 = vpop.permute.xlu0 %183 }
  0xab   :  { %714 = vperm.xlu0 %1540, %v620_v63  }
  0xad   :  { %v1889_v4 = vpop.permute.xlu1 %198  ;;  %1534 = vset.pattern.permute.xlu1 %v1568_v34  ;;  %v1892_v5 = vpop.permute.xlu0 %193 }
  0xae   :  { %406 = vperm.xlu1 %1534, %v1693_v14  }
  0xaf   :  { %724 = vperm.xlu0 %1540, %v622_v3  }
  0xb1   :  { %v1898_v7 = vpop.permute.xlu1 %208  ;;  %v1900_v8 = vpop.permute.xlu0 %203 }
  0xb2   :  { %1535 = vset.pattern.permute.xlu1 %v1567_v33  ;;  %v126_v33 = vshrl.u32 %v125_v29, 7 }
  0xb3   :  { %314 = vperm.xlu1 %1535, %v1705_v16   ;;  %734 = vperm.xlu0 %1540, %v624_v6  }
  0xb4   :  { %v127_v45 = vsub.s32 0, %v126_v33  ;;  %v323_v48 = vsub.s32 1, %v126_v33  ;;  %v423_v63 = vsub.s32 2, %v126_v33 }
  0xb5   :  { %v1907_v10 = vpop.permute.xlu1 %218  ;;  %v1909_v11 = vpop.permute.xlu0 %213 }
  0xb6   :  { %v1988_v6 = vrot.slane %v28_v54, %v127_v45 }
  0xb7   :  { %318 = vperm.xlu1 %1535, %v1700_v15   ;;  %744 = vperm.xlu0 %1540, %v626_v9   ;;  %v1990_v9 = vrot.slane %v28_v54, %v323_v48 }
  0xb8   :  { %v130_v29 = vmul.f32 %v1988_v6, %v1806_v39  ;;  %v1067_v39 = vld [vmem:[%s2511_s5 + $0x68] sm:$0xff] }
  0xb9   :  { %v1915_v14 = vpop.permute.xlu1 %228  ;;  %v1917_v17 = vpop.permute.xlu0 %223 }
  0xba   :  { %v242_v48 = vadd.f32 %v1865_v58, %v130_v29  ;;  %v1069_v58 = vld [vmem:[%s2511_s5 + $0x78] sm:$0xff]  ;;  %v617_v29 = vld [vmem:[%s2510_s4 + $0x60] sm:$0xff] }
  0xbb   :  { %1537 = vset.pattern.permute.xlu1 %v1569_v35  ;;  %754 = vperm.xlu0 %1540, %v628_v12  }
  0xbc   :  { %510 = vperm.xlu1 %1537, %v1688_v13   ;;  %v1055_v13 = vld [vmem:[%s2511_s5 + $0x8] sm:$0xff] }
  0xbd   :  { %v1924_v19 = vpop.permute.xlu1 %238  ;;  %v1926_v20 = vpop.permute.xlu0 %233 }
  0xbf   :  { %764 = vperm.xlu0 %1540, %v630_v18   ;;  %v523_v18 = vsub.s32 3, %v126_v33 }
  0xc0   :  { %1538 = vset.pattern.permute.xlu1 %v1568_v34  ;;  %v1061_v34 = vld [vmem:[%s2511_s5 + $0x38] sm:$0xff] }
  0xc1   :  { %414 = vperm.xlu1 %1538, %v1705_v16   ;;  %v2008_v45 = vrot.slane %v28_v54, %v523_v18 }
  0xc2   :  { %v263_v22 = vpop.permute.xlu1 %262  ;;  %v259_v23 = vpop.permute.xlu0 %258 }
  0xc3   :  { %774 = vperm.xlu0 %1540, %v632_v21   ;;  %v611_v21 = vld [vmem:[%s2510_s4 + $0x30] sm:$0xff]  ;;  %v325_v33 = vmul.f32 %v1990_v9, %v259_v23 }
  0xc5   :  { %1539 = vset.pattern.permute.xlu1 %v1569_v35 }
  0xc6   :  { %v1937_v24 = vpop.permute.xlu1 %266  ;;  %514 = vperm.xlu1 %1539, %v1705_v16   ;;  %v1940_v25 = vpop.permute.xlu0 %270  ;;  %v1059_v16 = vld [vmem:[%s2511_s5 + $0x28] sm:$0xff] }
  0xc7   :  { %1093 = vperm.xlu0 %1540, %v1055_v13   ;;  %v1065_v13 = vld [vmem:[%s2511_s5 + $0x58] sm:$0xff] }
  0xca   :  { %v1945_v27 = vpop.permute.xlu1 %274  ;;  %518 = vperm.xlu1 %1539, %v1700_v15   ;;  %v1948_v28 = vpop.permute.xlu0 %278  ;;  %v607_v15 = vld [vmem:[%s2510_s4 + $0x10] sm:$0xff] }
  0xcb   :  { %1103 = vperm.xlu0 %1540, %v1057_v26   ;;  %v129_v26 = vmul.f32 %v1988_v6, %v1800_v37  ;;  %v613_v37 = vld [vmem:[%s2510_s4 + $0x40] sm:$0xff] }
  0xce   :  { %v1956_v31 = vpop.permute.xlu1 %282  ;;  %v1958_v32 = vpop.permute.xlu0 %286  ;;  %1541 = vset.pattern.permute.xlu1 %v1566_v2  ;;  %v573_v2 = vld [vmem:[%s2509_s3] sm:$0xff] }
  0xcf   :  { %644 = vperm.xlu1 %1541, %v606_v30   ;;  %1113 = vperm.xlu0 %1540, %v1059_v16   ;;  %v2002_v30 = vrot.slane %v28_v54, %v423_v63  ;;  %v326_v16 = vmul.f32 %v1990_v9, %v263_v22  ;;  %v241_v22 = vadd.f32 %v1867_v59, %v129_v26  ;;  %v615_v63 = vld [vmem:[%s2510_s4 + $0x50] sm:$0xff] }
  0xd0   :  { %1413 = vmatprep.mubr.f32.mxu0 %v573_v2 }
  0xd1   :  { %v342_v51 = vadd.f32 %v326_v16, %v242_v48  ;;  %v1071_v16 = vld [vmem:[%s2511_s5 + $0x88] sm:$0xff] }
  0xd2   :  { %v1967_v35 = vpop.permute.xlu1 %290  ;;  %v1969_v42 = vpop.permute.xlu0 %294 }
  0xd3   :  { %649 = vperm.xlu1 %1541, %v607_v15   ;;  %1123 = vperm.xlu0 %1540, %v1061_v34  }
  0xd6   :  { %v1986_v3 = vpop.permute.xlu1 %298 }
  0xd7   :  { %v359_v12 = vpop.permute.xlu0 %358  ;;  %659 = vperm.xlu1 %1541, %v609_v57   ;;  %1133 = vperm.xlu0 %1540, %v1063_v60   ;;  %v341_v57 = vadd.f32 %v325_v33, %v241_v22  ;;  %v131_v33 = vmul.f32 %v1988_v6, %v1798_v36  ;;  %v619_v36 = vld [vmem:[%s2510_s4 + $0x70] sm:$0xff] }
  0xd8   :  { %v425_v23 = vmul.f32 %v2002_v30, %v359_v12 }
  0xd9   :  { %v243_v22 = vadd.f32 %v1875_v62, %v131_v33  ;;  %v328_v62 = vmul.f32 %v1990_v9, %v1940_v25  ;;  %v1075_v25 = vld [vmem:[%s2511_s5 + $0xa8] sm:$0xff]  ;;  %v330_v33 = vmul.f32 %v1990_v9, %v1948_v28 }
  0xda   :  { %v441_v18 = vadd.f32 %v425_v23, %v341_v57  ;;  %v132_v57 = vmul.f32 %v1988_v6, %v1804_v38 }
  0xdb   :  { %v363_v15 = vpop.permute.xlu1 %362  ;;  %v2006_v34 = vpop.permute.xlu0 %374  ;;  %669 = vperm.xlu1 %1541, %v611_v21   ;;  %1143 = vperm.xlu0 %1540, %v1065_v13  }
  0xdc   :  { %v426_v2 = vmul.f32 %v2002_v30, %v363_v15  ;;  %v327_v15 = vmul.f32 %v1990_v9, %v1937_v24  ;;  %v1073_v24 = vld [vmem:[%s2511_s5 + $0x98] sm:$0xff] }
  0xde   :  { %v442_v59 = vadd.f32 %v426_v2, %v342_v51 }
  0xdf   :  { %679 = vperm.xlu1 %1541, %v613_v37   ;;  %1153 = vperm.xlu0 %1540, %v1067_v39  }
  0xe0   :  { %v459_v54 = vpop.permute.xlu1 %458  ;;  %v463_v60 = vpop.permute.xlu0 %462 }
  0xe1   :  { %v525_v12 = vmul.f32 %v2008_v45, %v459_v54  ;;  %v526_v21 = vmul.f32 %v2008_v45, %v463_v60  ;;  %v343_v54 = vadd.f32 %v327_v15, %v243_v22  ;;  %v623_v15 = vld [vmem:[%s2510_s4 + $0x90] sm:$0xff] }
  0xe3   :  { %v541_v13 = vadd.f32 %v525_v12, %v441_v18  ;;  %v542_v26 = vadd.f32 %v526_v21, %v442_v59  ;;  %689 = vperm.xlu1 %1541, %v615_v63   ;;  %1163 = vperm.xlu0 %1540, %v1069_v58   ;;  %v244_v63 = vadd.f32 %v1873_v61, %v132_v57  ;;  %v621_v59 = vld [vmem:[%s2510_s4 + $0x80] sm:$0xff] }
  0xe4   :  { %v467_v51 = vpop.permute.xlu0 %466 }
  0xe5   :  { %v557_v37 = vmax.f32 %v541_v13, 0.0  ;;  %v558_v39 = vmax.f32 %v542_v26, 0.0  ;;  %v367_v48 = vpop.permute.xlu1 %366  ;;  %v527_v58 = vmul.f32 %v2008_v45, %v467_v51  ;;  %v344_v12 = vadd.f32 %v328_v62, %v244_v63 }
  0xe6   :  { %v427_v2 = vmul.f32 %v2002_v30, %v367_v48 }
  0xe7   :  { %v1461_v23 = vpack.c.bf16 %v558_v39, %v557_v37  ;;  %699 = vperm.xlu1 %1541, %v617_v29   ;;  %1173 = vperm.xlu0 %1540, %v1071_v16   ;;  %v134_v16 = vmul.f32 %v1988_v6, %v1811_v40  ;;  %v1077_v37 = vld [vmem:[%s2511_s5 + $0xb8] sm:$0xff]  ;;  %v133_v39 = vmul.f32 %v1988_v6, %v1813_v41 }
  0xe8   :  { %v443_v38 = vadd.f32 %v427_v2, %v343_v54  ;;  %v479_v21 = vpop.permute.xlu0 %478  ;;  %v329_v40 = vmul.f32 %v1990_v9, %v1945_v27  ;;  %v429_v41 = vmul.f32 %v2002_v30, %v2006_v34  ;;  %v625_v27 = vld [vmem:[%s2510_s4 + $0xa0] sm:$0xff] }
  0xe9   :  { %v371_v60 = vpop.permute.xlu1 %370  ;;  %1462 = vmatprep.subr.bf16.mxu0 %v1461_v23  ;;  %1493 = vmatprep.subr.bf16.mxu1 %v1461_v23  ;;  %v246_v22 = vadd.f32 %v1881_v0, %v134_v16  ;;  %v530_v54 = vmul.f32 %v2008_v45, %v479_v21 }
  0xea   :  { %1464 = vmatpush3.bf16.msra.mxu0 %v1461_v23  ;;  %1501 = vmatpush3.bf16.msra.mxu1 %v1461_v23  ;;  %v428_v18 = vmul.f32 %v2002_v30, %v371_v60  ;;  %v543_v13 = vadd.f32 %v527_v58, %v443_v38  ;;  %v1079_v60 = vld [vmem:[%s2511_s5 + $0xc8] sm:$0xff] }
  0xeb   :  { %709 = vperm.xlu1 %1541, %v619_v36   ;;  %1183 = vperm.xlu0 %1540, %v1073_v24   ;;  %v346_v57 = vadd.f32 %v330_v33, %v246_v22  ;;  %v245_v24 = vadd.f32 %v1884_v1, %v133_v39  ;;  %v136_v39 = vmul.f32 %v1988_v6, %v1821_v43 }
  0xec   :  { %v444_v26 = vadd.f32 %v428_v18, %v344_v12  ;;  %v559_v23 = vmax.f32 %v543_v13, 0.0  ;;  %v483_v2 = vpop.permute.xlu0 %482  ;;  %v135_v12 = vmul.f32 %v1988_v6, %v1823_v44  ;;  %v629_v44 = vld [vmem:[%s2510_s4 + $0xc0] sm:$0xff] }
  0xed   :  { %v345_v63 = vadd.f32 %v329_v40, %v245_v24  ;;  %v248_v40 = vadd.f32 %v1889_v4, %v136_v39  ;;  %v531_v43 = vmul.f32 %v2008_v45, %v483_v2 }
  0xee   :  { %v471_v61 = vpop.permute.xlu1 %470  ;;  %v247_v16 = vadd.f32 %v1892_v5, %v135_v12  ;;  %v332_v5 = vmul.f32 %v1990_v9, %v1958_v32  ;;  %v1082_v32 = vld [vmem:[%s2511_s5 + $0xe0] sm:$0xff]  ;;  %v1056_v12 = vld [vmem:[%s2511_s5 + $0x10] sm:$0xff] }
  0xef   :  { %v528_v29 = vmul.f32 %v2008_v45, %v471_v61  ;;  %719 = vperm.xlu1 %1541, %v621_v59   ;;  %1193 = vperm.xlu0 %1540, %v1075_v25   ;;  %v445_v1 = vadd.f32 %v429_v41, %v345_v63  ;;  %v627_v59 = vld [vmem:[%s2510_s4 + $0xb0] sm:$0xff]  ;;  %v331_v61 = vmul.f32 %v1990_v9, %v1956_v31  ;;  %v1081_v31 = vld [vmem:[%s2511_s5 + $0xd8] sm:$0xff] }
  0xf0   :  { %v2086_v34 = vpop.permute.xlu0 %490  ;;  %v1080_v25 = vld [vmem:[%s2511_s5 + $0xd0] sm:$0xff] }
  0xf1   :  { %v544_v48 = vadd.f32 %v528_v29, %v444_v26 }
  0xf3   :  { %v560_v28 = vmax.f32 %v544_v48, 0.0  ;;  %v379_v51 = vpop.permute.xlu1 %378  ;;  %729 = vperm.xlu1 %1541, %v623_v15   ;;  %1203 = vperm.xlu0 %1540, %v1077_v37   ;;  %v347_v48 = vadd.f32 %v331_v61, %v247_v16 }
  0xf4   :  { %v430_v36 = vmul.f32 %v2002_v30, %v379_v51  ;;  %v2100_v33 = vpop.permute.xlu0 %498  ;;  %v631_v51 = vld [vmem:[%s2510_s4 + $0xd0] sm:$0xff] }
  0xf5   :  { %v1465_v0 = vpack.c.bf16 %v560_v28, %v559_v23 }
  0xf6   :  { %v446_v62 = vadd.f32 %v430_v36, %v346_v57  ;;  %v348_v57 = vadd.f32 %v332_v5, %v248_v40 }
  0xf7   :  { %1466 = vmatprep.subr.bf16.mxu0 %v1465_v0  ;;  %1494 = vmatprep.subr.bf16.mxu1 %v1465_v0 }
  0xf8   :  { %v475_v38 = vpop.permute.xlu1 %474  ;;  %1468 = vmatpush3.bf16.msra.mxu0 %v1465_v0  ;;  %1502 = vmatpush3.bf16.msra.mxu1 %v1465_v0  ;;  %v546_v58 = vadd.f32 %v530_v54, %v446_v62  ;;  %v2122_v36 = vpop.permute.xlu0 %506  ;;  %v1054_v54 = vld [vmem:[%s2511_s5] sm:$0xff]  ;;  %v1083_v0 = vld [vmem:[%s2511_s5 + $0xe8] sm:$0xff] }
  0xf9   :  { %v529_v18 = vmul.f32 %v2008_v45, %v475_v38  ;;  %739 = vperm.xlu1 %1541, %v625_v27   ;;  %1213 = vperm.xlu0 %1540, %v1079_v60   ;;  %v137_v27 = vmul.f32 %v1988_v6, %v1833_v47  ;;  %v1085_v47 = vld [vmem:[%s2511_s5 + $0xf8] sm:$0xff] }
  0xfa   :  { %v562_v13 = vmax.f32 %v546_v58, 0.0  ;;  %v333_v58 = vmul.f32 %v1990_v9, %v1967_v35  ;;  %v334_v35 = vmul.f32 %v1990_v9, %v1969_v42 }
  0xfb   :  { %v545_v21 = vadd.f32 %v529_v18, %v445_v1 }
  0xfd   :  { %v561_v26 = vmax.f32 %v545_v21, 0.0  ;;  %v383_v29 = vpop.permute.xlu1 %382  ;;  %749 = vperm.xlu1 %1541, %v627_v59   ;;  %1218 = vperm.xlu0 %1540, %v1080_v25   ;;  %v391_v63 = vpop.permute.xlu0 %390  ;;  %v249_v59 = vadd.f32 %v1900_v8, %v137_v27  ;;  %v138_v21 = vmul.f32 %v1988_v6, %v1830_v46  ;;  %v1058_v46 = vld [vmem:[%s2511_s5 + $0x20] sm:$0xff]  ;;  %v1068_v27 = vld [vmem:[%s2511_s5 + $0x70] sm:$0xff] }
  0xfe   :  { %v431_v37 = vmul.f32 %v2002_v30, %v383_v29  ;;  %v433_v25 = vmul.f32 %v2002_v30, %v391_v63 }
  0xff   :  { %v1469_v15 = vpack.c.bf16 %v562_v13, %v561_v26  ;;  %v349_v61 = vadd.f32 %v333_v58, %v249_v59  ;;  %v250_v13 = vadd.f32 %v1898_v7, %v138_v21  ;;  %v533_v26 = vmul.f32 %v2008_v45, %v2086_v34  ;;  %v1060_v7 = vld [vmem:[%s2511_s5 + $0x30] sm:$0xff] }
 0x100   :  { %v447_v23 = vadd.f32 %v431_v37, %v347_v48 }
 0x101   :  { %v387_v22 = vpop.permute.xlu1 %386  ;;  %1470 = vmatprep.subr.bf16.mxu0 %v1469_v15  ;;  %1495 = vmatprep.subr.bf16.mxu1 %v1469_v15  ;;  %v449_v29 = vadd.f32 %v433_v25, %v349_v61 }
 0x102   :  { %1472 = vmatpush3.bf16.msra.mxu0 %v1469_v15  ;;  %1503 = vmatpush3.bf16.msra.mxu1 %v1469_v15  ;;  %v432_v28 = vmul.f32 %v2002_v30, %v387_v22  ;;  %v547_v24 = vadd.f32 %v531_v43, %v447_v23  ;;  %v350_v15 = vadd.f32 %v334_v35, %v250_v13  ;;  %v1062_v22 = vld [vmem:[%s2511_s5 + $0x40] sm:$0xff]  ;;  %v1064_v23 = vld [vmem:[%s2511_s5 + $0x50] sm:$0xff] }
 0x103   :  { %759 = vperm.xlu1 %1541, %v629_v44   ;;  %1223 = vperm.xlu0 %1540, %v1081_v31   ;;  %v549_v42 = vadd.f32 %v533_v26, %v449_v29  ;;  %v139_v43 = vmul.f32 %v1988_v6, %v1841_v50  ;;  %v142_v35 = vmul.f32 %v1988_v6, %v1847_v52  ;;  %v1074_v26 = vld [vmem:[%s2511_s5 + $0xa0] sm:$0xff] }
 0x104   :  { %v448_v41 = vadd.f32 %v432_v28, %v348_v57  ;;  %v563_v60 = vmax.f32 %v547_v24, 0.0  ;;  %v335_v28 = vmul.f32 %v1990_v9, %v1986_v3  ;;  %v403_v24 = vpop.permute.xlu0 %402 }
 0x105   :  { %v565_v34 = vmax.f32 %v549_v42, 0.0  ;;  %v251_v57 = vadd.f32 %v1909_v11, %v139_v43  ;;  %v436_v11 = vmul.f32 %v2002_v30, %v403_v24  ;;  %v634_v24 = vld [vmem:[%s2510_s4 + $0xe8] sm:$0xff] }
 0x106   :  { %v487_v4 = vpop.permute.xlu1 %486 }
 0x107   :  { %v532_v2 = vmul.f32 %v2008_v45, %v487_v4  ;;  %769 = vperm.xlu1 %1541, %v631_v51   ;;  %1228 = vperm.xlu0 %1540, %v1082_v32   ;;  %v140_v32 = vmul.f32 %v1988_v6, %v1838_v49 }
 0x108   :  { %v411_v29 = vpop.permute.xlu0 %410 }
 0x109   :  { %v548_v62 = vadd.f32 %v532_v2, %v448_v41  ;;  %v1066_v41 = vld [vmem:[%s2511_s5 + $0x60] sm:$0xff]  ;;  %v252_v3 = vadd.f32 %v1907_v10, %v140_v32  ;;  %v351_v2 = vadd.f32 %v335_v28, %v251_v57  ;;  %v438_v42 = vmul.f32 %v2002_v30, %v411_v29  ;;  %v583_v29 = vld [vmem:[%s2509_s3 + $0x50] sm:$0xff] }
 0x10a   :  { %v1070_v10 = vld [vmem:[%s2511_s5 + $0x80] sm:$0xff] }
 0x10b   :  { %v564_v38 = vmax.f32 %v548_v62, 0.0  ;;  %v395_v1 = vpop.permute.xlu1 %394  ;;  %1088 = vperm.xlu1 %1541, %v1054_v54   ;;  %1233 = vperm.xlu0 %1540, %v1083_v0   ;;  %v535_v0 = vmul.f32 %v2008_v45, %v2100_v33 }
 0x10c   :  { %v434_v16 = vmul.f32 %v2002_v30, %v395_v1  ;;  %v419_v57 = vpop.permute.xlu0 %418 }
 0x10d   :  { %v1473_v18 = vpack.c.bf16 %v564_v38, %v563_v60 }
 0x10e   :  { %v450_v39 = vadd.f32 %v434_v16, %v350_v15  ;;  %v254_v16 = vadd.f32 %v1915_v14, %v142_v35  ;;  %v596_v35 = vld [vmem:[%s2509_s3 + $0xb8] sm:$0xff] }
 0x10f   :  { %1474 = vmatprep.subr.bf16.mxu0 %v1473_v18  ;;  %1496 = vmatprep.subr.bf16.mxu1 %v1473_v18 }
 0x110   :  { %v303_v8 = vpop.permute.xlu1 %302  ;;  %1476 = vmatpush3.bf16.msra.mxu0 %v1473_v18  ;;  %1504 = vmatpush3.bf16.msra.mxu1 %v1473_v18 }
 0x111   :  { %1098 = vperm.xlu1 %1541, %v1056_v12   ;;  %1243 = vperm.xlu0 %1540, %v1085_v47   ;;  %v336_v50 = vmul.f32 %v1990_v9, %v303_v8  ;;  %v141_v12 = vmul.f32 %v1988_v6, %v1849_v53  ;;  %v1072_v47 = vld [vmem:[%s2511_s5 + $0x90] sm:$0xff] }
 0x113   :  { %v352_v49 = vadd.f32 %v336_v50, %v252_v3  ;;  %v253_v8 = vadd.f32 %v1917_v17, %v141_v12  ;;  %v1076_v17 = vld [vmem:[%s2511_s5 + $0xb0] sm:$0xff]  ;;  %v594_v12 = vld [vmem:[%s2509_s3 + $0xa8] sm:$0xff] }
 0x115   :  { %v495_v37 = vpop.permute.xlu1 %494  ;;  %1108 = vperm.xlu1 %1541, %v1058_v46   ;;  %v452_v63 = vadd.f32 %v436_v11, %v352_v49 }
 0x116   :  { %v534_v44 = vmul.f32 %v2008_v45, %v495_v37 }
 0x118   :  { %v550_v31 = vadd.f32 %v534_v44, %v450_v39  ;;  %v537_v39 = vmul.f32 %v2008_v45, %v2122_v36  ;;  %v633_v36 = vld [vmem:[%s2510_s4 + $0xe0] sm:$0xff] }
 0x119   :  { %1118 = vperm.xlu1 %1541, %v1060_v7  }
 0x11a   :  { %v566_v48 = vmax.f32 %v550_v31, 0.0  ;;  %v399_v5 = vpop.permute.xlu1 %398 }
 0x11b   :  { %v435_v4 = vmul.f32 %v2002_v30, %v399_v5  ;;  %v143_v5 = vmul.f32 %v1988_v6, %v1858_v56 }
 0x11c   :  { %v1477_v40 = vpack.c.bf16 %v566_v48, %v565_v34  ;;  %v1078_v34 = vld [vmem:[%s2511_s5 + $0xc0] sm:$0xff] }
 0x11d   :  { %1128 = vperm.xlu1 %1541, %v1062_v22   ;;  %v451_v62 = vadd.f32 %v435_v4, %v351_v2  ;;  %v255_v56 = vadd.f32 %v1926_v20, %v143_v5  ;;  %v635_v20 = vld [vmem:[%s2510_s4 + $0xf0] sm:$0xff] }
 0x11e   :  { %1478 = vmatprep.subr.bf16.mxu0 %v1477_v40  ;;  %1497 = vmatprep.subr.bf16.mxu1 %v1477_v40 }
 0x11f   :  { %v307_v51 = vpop.permute.xlu1 %306  ;;  %1480 = vmatpush3.bf16.msra.mxu0 %v1477_v40  ;;  %1505 = vmatpush3.bf16.msra.mxu1 %v1477_v40  ;;  %v551_v38 = vadd.f32 %v535_v0, %v451_v62  ;;  %v636_v62 = vld [vmem:[%s2510_s4 + $0xf8] sm:$0xff] }
 0x120   :  { %v337_v21 = vmul.f32 %v1990_v9, %v307_v51 }
 0x121   :  { %1138 = vperm.xlu1 %1541, %v1064_v23   ;;  %v567_v58 = vmax.f32 %v551_v38, 0.0  ;;  %v144_v23 = vmul.f32 %v1988_v6, %v1856_v55  ;;  %v590_v38 = vld [vmem:[%s2509_s3 + $0x88] sm:$0xff] }
 0x122   :  { %v353_v46 = vadd.f32 %v337_v21, %v253_v8  ;;  %v595_v21 = vld [vmem:[%s2509_s3 + $0xb0] sm:$0xff]  ;;  %v581_v8 = vld [vmem:[%s2509_s3 + $0x40] sm:$0xff] }
 0x123   :  { %v311_v54 = vpop.permute.xlu1 %310  ;;  %v256_v50 = vadd.f32 %v1924_v19, %v144_v23 }
 0x124   :  { %v338_v13 = vmul.f32 %v1990_v9, %v311_v54 }
 0x125   :  { %1148 = vperm.xlu1 %1541, %v1066_v41   ;;  %v440_v41 = vmul.f32 %v2002_v30, %v419_v57 }
 0x126   :  { %v354_v37 = vadd.f32 %v338_v13, %v254_v16  ;;  %v597_v13 = vld [vmem:[%s2509_s3 + $0xc0] sm:$0xff]  ;;  %v599_v16 = vld [vmem:[%s2509_s3 + $0xd0] sm:$0xff] }
 0x128   :  { %v503_v60 = vpop.permute.xlu1 %502  ;;  %v454_v7 = vadd.f32 %v438_v42, %v354_v37  ;;  %v585_v37 = vld [vmem:[%s2509_s3 + $0x60] sm:$0xff] }
 0x129   :  { %v536_v1 = vmul.f32 %v2008_v45, %v503_v60  ;;  %1158 = vperm.xlu1 %1541, %v1068_v27   ;;  %v601_v42 = vld [vmem:[%s2509_s3 + $0xe0] sm:$0xff] }
 0x12b   :  { %v552_v33 = vadd.f32 %v536_v1, %v452_v63  ;;  %v1084_v63 = vld [vmem:[%s2511_s5 + $0xf0] sm:$0xff]  ;;  %s1546_s5 = scalar_lea.vmem %s1326_s26, 32 }
 0x12c   :  { %v575_v1 = vld [vmem:[%s2509_s3 + $0x10] sm:$0xff]  ;;  %p1548_p2 = scmp.lt.s32.totalorder %s1546_s5, %s1542_s27 }
 0x12d   :  { %v568_v18 = vmax.f32 %v552_v33, 0.0  ;;  %v407_v59 = vpop.permute.xlu1 %406  ;;  %1168 = vperm.xlu1 %1541, %v1070_v10   ;;  %v591_v10 = vld [vmem:[%s2509_s3 + $0x90] sm:$0xff]  ;;  %v576_v33 = vld [vmem:[%s2509_s3 + $0x18] sm:$0xff] }
 0x12e   :  { %v437_v53 = vmul.f32 %v2002_v30, %v407_v59  ;;  %v593_v59 = vld [vmem:[%s2509_s3 + $0xa0] sm:$0xff]  ;;  %p1549_p3 = por %p1548_p2, %p1547_p1 }
 0x12f   :  { %v1481_v25 = vpack.c.bf16 %v568_v18, %v567_v58  ;;  %v592_v58 = vld [vmem:[%s2509_s3 + $0x98] sm:$0xff]  ;;  %v577_v18 = vld [vmem:[%s2509_s3 + $0x20] sm:$0xff] }
 0x130   :  { %v453_v52 = vadd.f32 %v437_v53, %v353_v46  ;;  %v582_v53 = vld [vmem:[%s2509_s3 + $0x48] sm:$0xff]  ;;  %v584_v46 = vld [vmem:[%s2509_s3 + $0x58] sm:$0xff]  ;;  %p1550_p4 = pnand %p1549_p3, %p1543_p0 }
 0x131   :  { %1482 = vmatprep.subr.bf16.mxu0 %v1481_v25  ;;  %1498 = vmatprep.subr.bf16.mxu1 %v1481_v25 }
 0x132   :  { %v315_v61 = vpop.permute.xlu1 %314  ;;  %1484 = vmatpush3.bf16.msra.mxu0 %v1481_v25  ;;  %1506 = vmatpush3.bf16.msra.mxu1 %v1481_v25  ;;  %v553_v31 = vadd.f32 %v537_v39, %v453_v52  ;;  %v578_v25 = vld [vmem:[%s2509_s3 + $0x28] sm:$0xff]  ;;  %v587_v39 = vld [vmem:[%s2509_s3 + $0x70] sm:$0xff] }
 0x133   :  { %1178 = vperm.xlu1 %1541, %v1072_v47   ;;  %v339_v28 = vmul.f32 %v1990_v9, %v315_v61  ;;  %v579_v47 = vld [vmem:[%s2509_s3 + $0x30] sm:$0xff]  ;;  %v580_v61 = vld [vmem:[%s2509_s3 + $0x38] sm:$0xff]  ;;  %v586_v52 = vld [vmem:[%s2509_s3 + $0x68] sm:$0xff] }
 0x134   :  { %v569_v22 = vmax.f32 %v553_v31, 0.0  ;;  %v604_v31 = vld [vmem:[%s2509_s3 + $0xf8] sm:$0xff] }
 0x135   :  { %v355_v6 = vadd.f32 %v339_v28, %v255_v56 }
 0x136   :  { %v319_v15 = vpop.permute.xlu1 %318 }
 0x137   :  { %1188 = vperm.xlu1 %1541, %v1074_v26   ;;  %v340_v51 = vmul.f32 %v1990_v9, %v319_v15  ;;  %v598_v26 = vld [vmem:[%s2509_s3 + $0xc8] sm:$0xff]  ;;  %v600_v15 = vld [vmem:[%s2509_s3 + $0xd8] sm:$0xff] }
 0x139   :  { %v356_v9 = vadd.f32 %v340_v51, %v256_v50 }
 0x13b   :  { %v511_v44 = vpop.permute.xlu1 %510  ;;  %1198 = vperm.xlu1 %1541, %v1076_v17   ;;  %v456_v54 = vadd.f32 %v440_v41, %v356_v9  ;;  %v602_v17 = vld [vmem:[%s2509_s3 + $0xe8] sm:$0xff] }
 0x13c   :  { %v538_v14 = vmul.f32 %v2008_v45, %v511_v44  ;;  %v603_v44 = vld [vmem:[%s2509_s3 + $0xf0] sm:$0xff] }
 0x13e   :  { %v554_v48 = vadd.f32 %v538_v14, %v454_v7  ;;  %v588_v7 = vld [vmem:[%s2509_s3 + $0x78] sm:$0xff] }
 0x13f   :  { %1208 = vperm.xlu1 %1541, %v1078_v34   ;;  %v640_v34 = vpop.permute.xlu0 %639 }
 0x140   :  { %v570_v40 = vmax.f32 %v554_v48, 0.0  ;;  %v415_v43 = vpop.permute.xlu1 %414 }
 0x141   :  { %v439_v4 = vmul.f32 %v2002_v30, %v415_v43 }
 0x142   :  { %v1485_v32 = vpack.c.bf16 %v570_v40, %v569_v22 }
 0x143   :  { %779 = vperm.xlu1 %1541, %v633_v36   ;;  %v455_v19 = vadd.f32 %v439_v4, %v355_v6  ;;  %v655_v5 = vpop.permute.xlu0 %654 }
 0x144   :  { %1486 = vmatprep.subr.bf16.mxu0 %v1485_v32  ;;  %1499 = vmatprep.subr.bf16.mxu1 %v1485_v32 }
 0x145   :  { %v515_v55 = vpop.permute.xlu1 %514  ;;  %1488 = vmatpush3.bf16.msra.mxu0 %v1485_v32  ;;  %1507 = vmatpush3.bf16.msra.mxu1 %v1485_v32 }
 0x146   :  { %v539_v3 = vmul.f32 %v2008_v45, %v515_v55 }
 0x147   :  { %784 = vperm.xlu1 %1541, %v634_v24   ;;  %v665_v40 = vpop.permute.xlu0 %664 }
 0x148   :  { %v555_v0 = vadd.f32 %v539_v3, %v455_v19 }
 0x149   :  { %v519_v2 = vpop.permute.xlu1 %518 }
 0x14a   :  { %v540_v49 = vmul.f32 %v2008_v45, %v519_v2  ;;  %v571_v30 = vmax.f32 %v555_v0, 0.0  ;;  %v574_v45 = vld [vmem:[%s2509_s3 + $0x8] sm:$0xff] }
 0x14b   :  { %789 = vperm.xlu1 %1541, %v635_v20   ;;  %v2333_v36 = vpop.permute.xlu0 %674 }
 0x14c   :  { %v556_v11 = vadd.f32 %v540_v49, %v456_v54 }
 0x14e   :  { %v572_v27 = vmax.f32 %v556_v11, 0.0  ;;  %v645_v14 = vpop.permute.xlu1 %644 }
 0x14f   :  { %794 = vperm.xlu1 %1541, %v636_v62   ;;  %v2337_v28 = vpop.permute.xlu0 %684 }
 0x150   :  { %v1489_v60 = vpack.c.bf16 %v572_v27, %v571_v30 }
 0x152   :  { %1490 = vmatprep.subr.bf16.mxu0 %v1489_v60  ;;  %1500 = vmatprep.subr.bf16.mxu1 %v1489_v60  ;;  %v650_v48 = vpop.permute.xlu1 %649 }
 0x153   :  { %1492 = vmatpush3.bf16.msra.mxu0 %v1489_v60  ;;  %1508 = vmatpush3.bf16.msra.mxu1 %v1489_v60  ;;  %v2341_v32 = vpop.permute.xlu0 %694 }
 0x154   :  { %1238 = vperm.xlu1 %1541, %v1084_v63  }
 0x156   :  { %1414 = vmatmul.mubr.f32.vlgmr.msra.gmra.mrb[0].mxu0 %v574_v45  ;;  %1438 = vmatmul.mubr.f32.vlgmr.msra.gmra.mrb[0].mxu1 %v590_v38  ;;  %v2329_v22 = vpop.permute.xlu1 %659 }
 0x157   :  { %1416 = vmatprep.mubr.f32.mxu0 %v575_v1  ;;  %1440 = vmatprep.mubr.f32.mxu1 %v591_v10  ;;  %v2345_v50 = vpop.permute.xlu0 %704 }
 0x15a   :  { %1417 = vmatmul.mubr.f32.gmra.mrb[2].mxu0 %v576_v33  ;;  %1441 = vmatmul.mubr.f32.gmra.mrb[2].mxu1 %v592_v58  ;;  %v2331_v43 = vpop.permute.xlu1 %669 }
 0x15b   :  { %1419 = vmatprep.mubr.f32.mxu0 %v577_v18  ;;  %1443 = vmatprep.mubr.f32.mxu1 %v593_v59  ;;  %v2349_v4 = vpop.permute.xlu0 %714 }
 0x15e   :  { %1420 = vmatmul.mubr.f32.gmra.mrb[4].mxu0 %v578_v25  ;;  %1444 = vmatmul.mubr.f32.gmra.mrb[4].mxu1 %v594_v12  ;;  %v2335_v23 = vpop.permute.xlu1 %679 }
 0x15f   :  { %1422 = vmatprep.mubr.f32.mxu0 %v579_v47  ;;  %1446 = vmatprep.mubr.f32.mxu1 %v595_v21  ;;  %v2353_v55 = vpop.permute.xlu0 %724 }
 0x162   :  { %1423 = vmatmul.mubr.f32.gmra.mrb[6].mxu0 %v580_v61  ;;  %1447 = vmatmul.mubr.f32.gmra.mrb[6].mxu1 %v596_v35  ;;  %v2339_v51 = vpop.permute.xlu1 %689 }
 0x163   :  { %1425 = vmatprep.mubr.f32.mxu0 %v581_v8  ;;  %1449 = vmatprep.mubr.f32.mxu1 %v597_v13  ;;  %v2357_v9 = vpop.permute.xlu0 %734 }
 0x166   :  { %1426 = vmatmul.mubr.f32.gmra.mrb[8].mxu0 %v582_v53  ;;  %1450 = vmatmul.mubr.f32.gmra.mrb[8].mxu1 %v598_v26  ;;  %v2343_v57 = vpop.permute.xlu1 %699 }
 0x167   :  { %1428 = vmatprep.mubr.f32.mxu0 %v583_v29  ;;  %1452 = vmatprep.mubr.f32.mxu1 %v599_v16  ;;  %v2361_v3 = vpop.permute.xlu0 %744 }
 0x16a   :  { %1429 = vmatmul.mubr.f32.gmra.mrb[10].mxu0 %v584_v46  ;;  %1453 = vmatmul.mubr.f32.gmra.mrb[10].mxu1 %v600_v15  ;;  %v2347_v56 = vpop.permute.xlu1 %709 }
 0x16b   :  { %1431 = vmatprep.mubr.f32.mxu0 %v585_v37  ;;  %1455 = vmatprep.mubr.f32.mxu1 %v601_v42  ;;  %v2365_v20 = vpop.permute.xlu0 %754 }
 0x16e   :  { %1432 = vmatmul.mubr.f32.gmra.mrb[12].mxu0 %v586_v52  ;;  %1456 = vmatmul.mubr.f32.gmra.mrb[12].mxu1 %v602_v17  ;;  %v2351_v24 = vpop.permute.xlu1 %719 }
 0x16f   :  { %1434 = vmatprep.mubr.f32.mxu0 %v587_v39  ;;  %1458 = vmatprep.mubr.f32.mxu1 %v603_v44  ;;  %v2369_v54 = vpop.permute.xlu0 %764 }
 0x172   :  { %1435 = vmatmul.mubr.f32.gmra.mrb[14].mxu0 %v588_v7  ;;  %1459 = vmatmul.mubr.f32.gmra.mrb[14].mxu1 %v604_v31  ;;  %v2355_v6 = vpop.permute.xlu1 %729 }
 0x173   :  { %v2373_v49 = vpop.permute.xlu0 %774 }
 0x174   :  { %2514 = vst [vmem:[#allocation6_spill] sm:$0xff] %v2373_v49 }
 0x177   :  { %v1094_v62 = vpop.permute.xlu0 %1093 }
 0x178   :  { %v2359_v41 = vpop.permute.xlu1 %739 }
 0x17b   :  { %v1104_v27 = vpop.permute.xlu0 %1103 }
 0x17c   :  { %v2363_v19 = vpop.permute.xlu1 %749 }
 0x17f   :  { %v1114_v63 = vpop.permute.xlu0 %1113 }
 0x182   :  { %v2367_v2 = vpop.permute.xlu1 %759 }
 0x183   :  { %v2375_v38 = vpop.permute.xlu0 %1123 }
 0x186   :  { %v2371_v0 = vpop.permute.xlu1 %769 }
 0x187   :  { %v2379_v10 = vpop.permute.xlu0 %1133 }
 0x18a   :  { %v1089_v11 = vpop.permute.xlu1 %1088 }
 0x18b   :  { %v2383_v58 = vpop.permute.xlu0 %1143 }
 0x18f   :  { %v2387_v59 = vpop.permute.xlu0 %1153 }
 0x190   :  { %v1099_v30 = vpop.permute.xlu1 %1098 }
 0x193   :  { %v2391_v12 = vpop.permute.xlu0 %1163 }
 0x194   :  { %v1109_v60 = vpop.permute.xlu1 %1108 }
 0x197   :  { %v2403_v44 = vpop.permute.xlu0 %1173 }
 0x198   :  { %v1119_v45 = vpop.permute.xlu1 %1118 }
 0x19c   :  { %v2377_v1 = vpop.permute.xlu1 %1128 }
 0x1a0   :  { %v2381_v33 = vpop.permute.xlu1 %1138 }
 0x1a4   :  { %v2385_v18 = vpop.permute.xlu1 %1148 }
 0x1a8   :  { %v2389_v25 = vpop.permute.xlu1 %1158 }
 0x1ac   :  { %v2397_v53 = vpop.permute.xlu1 %1168 }
 0x229   :  { %v1415_v47 = vpop.f32.mrb[0].mxu0  ;;  %v2393_v21 = vpop.f32.mrb[0].mxu1 }
 0x22a   :  { %v869_v61 = vadd.f32 %v1415_v47, %v645_v14  ;;  %v863_v35 = vpop.f32.mrb[1].mxu0  ;;  %v2395_v8 = vpop.f32.mrb[1].mxu1 }
 0x22b   :  { %v864_v13 = vadd.f32 %v863_v35, %v640_v34 }
 0x22c   :  { %v1023_v26 = vmax.f32 %v869_v61, 0.0 }
 0x22d   :  { %v1022_v29 = vmax.f32 %v864_v13, 0.0  ;;  %v1418_v16 = vpop.f32.mrb[2].mxu0  ;;  %v2399_v46 = vpop.f32.mrb[2].mxu1 }
 0x22e   :  { %v1247_v15 = vmul.f32 %v1094_v62, %v1023_v26  ;;  %v879_v37 = vadd.f32 %v1418_v16, %v655_v5  ;;  %v873_v42 = vpop.f32.mrb[3].mxu0  ;;  %v2401_v52 = vpop.f32.mrb[3].mxu1 }
 0x22f   :  { %v1246_v17 = vmul.f32 %v1089_v11, %v1022_v29  ;;  %v874_v39 = vadd.f32 %v873_v42, %v650_v48  ;;  %v2410_v62 = vpop.permute.xlu1 %1178 }
 0x230   :  { %v1025_v31 = vmax.f32 %v879_v37, 0.0 }
 0x231   :  { %v1278_v7 = vadd.f32 %v1247_v15, %v1246_v17  ;;  %v1024_v14 = vmax.f32 %v874_v39, 0.0  ;;  %v1421_v34 = vpop.f32.mrb[4].mxu0  ;;  %v2405_v47 = vpop.f32.mrb[4].mxu1 }
 0x232   :  { %v889_v61 = vadd.f32 %v1421_v34, %v665_v40  ;;  %v883_v35 = vpop.f32.mrb[5].mxu0  ;;  %v2407_v13 = vpop.f32.mrb[5].mxu1  ;;  %v1249_v26 = vmul.f32 %v1104_v27, %v1025_v31 }
 0x233   :  { %v1248_v49 = vmul.f32 %v1099_v30, %v1024_v14  ;;  %v884_v5 = vadd.f32 %v883_v35, %v2329_v22  ;;  %v2418_v14 = vpop.permute.xlu0 %1183 }
 0x234   :  { %v1027_v48 = vmax.f32 %v889_v61, 0.0 }
 0x235   :  { %v1279_v11 = vadd.f32 %v1278_v7, %v1248_v49  ;;  %v1026_v29 = vmax.f32 %v884_v5, 0.0  ;;  %v1424_v16 = vpop.f32.mrb[6].mxu0  ;;  %v2412_v15 = vpop.f32.mrb[6].mxu1 }
 0x236   :  { %v899_v37 = vadd.f32 %v1424_v16, %v2333_v36  ;;  %v893_v42 = vpop.f32.mrb[7].mxu0  ;;  %v2415_v17 = vpop.f32.mrb[7].mxu1  ;;  %v1251_v22 = vmul.f32 %v1114_v63, %v1027_v48 }
 0x237   :  { %v1250_v40 = vmul.f32 %v1109_v60, %v1026_v29  ;;  %v1280_v39 = vadd.f32 %v1279_v11, %v1249_v26  ;;  %v894_v30 = vadd.f32 %v893_v42, %v2331_v43  ;;  %v2426_v26 = vpop.permute.xlu1 %1188 }
 0x238   :  { %v1029_v27 = vmax.f32 %v899_v37, 0.0 }
 0x239   :  { %v1281_v34 = vadd.f32 %v1280_v39, %v1250_v40  ;;  %v1028_v49 = vmax.f32 %v894_v30, 0.0  ;;  %v1427_v7 = vpop.f32.mrb[8].mxu0  ;;  %v2420_v31 = vpop.f32.mrb[8].mxu1 }
 0x23a   :  { %v909_v61 = vadd.f32 %v1427_v7, %v2337_v28  ;;  %v903_v35 = vpop.f32.mrb[9].mxu0  ;;  %v2423_v36 = vpop.f32.mrb[9].mxu1  ;;  %v1253_v43 = vmul.f32 %v2375_v38, %v1029_v27 }
 0x23b   :  { %v1252_v5 = vmul.f32 %v1119_v45, %v1028_v49  ;;  %v1282_v16 = vadd.f32 %v1281_v34, %v1251_v22  ;;  %v904_v60 = vadd.f32 %v903_v35, %v2335_v23  ;;  %v2436_v30 = vpop.permute.xlu0 %1193 }
 0x23c   :  { %v1031_v11 = vmax.f32 %v909_v61, 0.0 }
 0x23d   :  { %v1283_v63 = vadd.f32 %v1282_v16, %v1252_v5  ;;  %v1030_v48 = vmax.f32 %v904_v60, 0.0  ;;  %v1430_v29 = vpop.f32.mrb[10].mxu0  ;;  %v2429_v37 = vpop.f32.mrb[10].mxu1 }
 0x23e   :  { %v919_v42 = vadd.f32 %v1430_v29, %v2341_v32  ;;  %v913_v28 = vpop.f32.mrb[11].mxu0  ;;  %v2432_v40 = vpop.f32.mrb[11].mxu1  ;;  %v1255_v38 = vmul.f32 %v2379_v10, %v1031_v11 }
 0x23f   :  { %v1254_v45 = vmul.f32 %v2377_v1, %v1030_v48  ;;  %v1284_v39 = vadd.f32 %v1283_v63, %v1253_v43  ;;  %v914_v23 = vadd.f32 %v913_v28, %v2339_v51  ;;  %v1199_v16 = vpop.permute.xlu1 %1198 }
 0x240   :  { %v1033_v34 = vmax.f32 %v919_v42, 0.0 }
 0x241   :  { %v1285_v22 = vadd.f32 %v1284_v39, %v1254_v45  ;;  %v1032_v27 = vmax.f32 %v914_v23, 0.0  ;;  %v1433_v49 = vpop.f32.mrb[12].mxu0  ;;  %v2439_v7 = vpop.f32.mrb[12].mxu1  ;;  %v949_v39 = vadd.f32 %v2393_v21, %v2353_v55 }
 0x242   :  { %v929_v32 = vadd.f32 %v1433_v49, %v2345_v50  ;;  %v923_v61 = vpop.f32.mrb[13].mxu0  ;;  %v2442_v35 = vpop.f32.mrb[13].mxu1  ;;  %v1257_v60 = vmul.f32 %v2383_v58, %v1033_v34 }
 0x243   :  { %v1256_v1 = vmul.f32 %v2381_v33, %v1032_v27  ;;  %v1286_v5 = vadd.f32 %v1285_v22, %v1255_v38  ;;  %v924_v51 = vadd.f32 %v923_v61, %v2343_v57  ;;  %v944_v33 = vadd.f32 %v2395_v8, %v2351_v24  ;;  %v1204_v58 = vpop.permute.xlu0 %1203 }
 0x244   :  { %v1035_v43 = vmax.f32 %v929_v32, 0.0  ;;  %v954_v27 = vadd.f32 %v2401_v52, %v2355_v6  ;;  %v1039_v49 = vmax.f32 %v949_v39, 0.0  ;;  %v969_v52 = vadd.f32 %v2405_v47, %v2361_v3 }
 0x245   :  { %v1287_v10 = vadd.f32 %v1286_v5, %v1256_v1  ;;  %v1034_v63 = vmax.f32 %v924_v51, 0.0  ;;  %v1436_v11 = vpop.f32.mrb[14].mxu0  ;;  %v2447_v48 = vpop.f32.mrb[14].mxu1  ;;  %v1038_v34 = vmax.f32 %v944_v33, 0.0  ;;  %v964_v1 = vadd.f32 %v2407_v13, %v2359_v41 }
 0x246   :  { %v939_v29 = vadd.f32 %v1436_v11, %v2349_v4  ;;  %v933_v50 = vpop.f32.mrb[15].mxu0  ;;  %v2450_v42 = vpop.f32.mrb[15].mxu1  ;;  %v1259_v23 = vmul.f32 %v2387_v59, %v1035_v43  ;;  %v1040_v61 = vmax.f32 %v954_v27, 0.0  ;;  %v1263_v6 = vmul.f32 %v2403_v44, %v1039_v49 }
 0x247   :  { %v1258_v28 = vmul.f32 %v2385_v18, %v1034_v63  ;;  %v1288_v57 = vadd.f32 %v1287_v10, %v1257_v60  ;;  %v934_v45 = vadd.f32 %v933_v50, %v2347_v56  ;;  %v1209_v18 = vpop.permute.xlu1 %1208  ;;  %v959_v56 = vadd.f32 %v2399_v46, %v2357_v9  ;;  %v1214_v21 = vpop.permute.xlu0 %1213 }
 0x248   :  { %v1037_v22 = vmax.f32 %v939_v29, 0.0  ;;  %v1262_v59 = vmul.f32 %v2397_v53, %v1038_v34  ;;  %v1264_v9 = vmul.f32 %v2410_v62, %v1040_v61  ;;  %v974_v46 = vadd.f32 %v2415_v17, %v2363_v19 }
 0x249   :  { %v1289_v38 = vadd.f32 %v1288_v57, %v1258_v28  ;;  %v1036_v4 = vmax.f32 %v934_v45, 0.0  ;;  %v1043_v41 = vmax.f32 %v969_v52, 0.0  ;;  %v979_v44 = vadd.f32 %v2412_v15, %v2365_v20  ;;  %v2515_v45 = vld [vmem:[#allocation6_spill] sm:$0xff] }
 0x24a   :  { %v1261_v32 = vmul.f32 %v2391_v12, %v1037_v22  ;;  %v1042_v12 = vmax.f32 %v964_v1, 0.0  ;;  %v1044_v3 = vmax.f32 %v974_v46, 0.0  ;;  %v984_v47 = vadd.f32 %v2423_v36, %v2367_v2 }
 0x24b   :  { %v1260_v24 = vmul.f32 %v2389_v25, %v1036_v4  ;;  %v1290_v8 = vadd.f32 %v1289_v38, %v1259_v23  ;;  %v1041_v25 = vmax.f32 %v959_v56, 0.0  ;;  %v780_v60 = vpop.permute.xlu1 %779  ;;  %v1219_v10 = vpop.permute.xlu0 %1218  ;;  %v1267_v29 = vmul.f32 %v2436_v30, %v1043_v41 }
 0x24c   :  { %v1266_v63 = vmul.f32 %v2426_v26, %v1042_v12  ;;  %v1045_v19 = vmax.f32 %v979_v44, 0.0  ;;  %v989_v17 = vadd.f32 %v2420_v31, %v2369_v54  ;;  %v1268_v33 = vmul.f32 %v1199_v16, %v1044_v3 }
 0x24d   :  { %v1291_v55 = vadd.f32 %v1290_v8, %v1260_v24  ;;  %v1265_v43 = vmul.f32 %v2418_v14, %v1041_v25  ;;  %v1046_v28 = vmax.f32 %v984_v47, 0.0  ;;  %v994_v20 = vadd.f32 %v2432_v40, %v2371_v0 }
 0x24e   :  { %v1269_v26 = vmul.f32 %v1204_v58, %v1045_v19  ;;  %v1047_v57 = vmax.f32 %v989_v17, 0.0  ;;  %v999_v2 = vadd.f32 %v2429_v37, %v2515_v45  ;;  %v1004_v38 = vadd.f32 %v2442_v35, %v780_v60 }
 0x24f   :  { %v1292_v5 = vadd.f32 %v1291_v55, %v1261_v32  ;;  %v785_v11 = vpop.permute.xlu1 %784  ;;  %v1224_v50 = vpop.permute.xlu0 %1223  ;;  %v1270_v30 = vmul.f32 %v1209_v18, %v1046_v28  ;;  %v1048_v23 = vmax.f32 %v994_v20, 0.0  ;;  %v1316_v46 = vstv %s2512_s6 }
 0x250   :  { %v1271_v22 = vmul.f32 %v1214_v21, %v1047_v57  ;;  %v1049_v16 = vmax.f32 %v999_v2, 0.0  ;;  %v1009_v4 = vadd.f32 %v2439_v7, %v785_v11  ;;  %v1050_v40 = vmax.f32 %v1004_v38, 0.0 }
 0x251   :  { %v1293_v51 = vadd.f32 %v1292_v5, %v1262_v59  ;;  %v1272_v0 = vmul.f32 %v1219_v10, %v1048_v23 }
 0x252   :  { %v1273_v37 = vmul.f32 %v1224_v50, %v1049_v16  ;;  %v1051_v8 = vmax.f32 %v1009_v4, 0.0 }
 0x253   :  { %v1294_v53 = vadd.f32 %v1293_v51, %v1263_v6  ;;  %v790_v39 = vpop.permute.xlu1 %789  ;;  %v1229_v31 = vpop.permute.xlu0 %1228 }
 0x254   :  { %v1014_v58 = vadd.f32 %v2450_v42, %v790_v39  ;;  %v1274_v35 = vmul.f32 %v1229_v31, %v1050_v40 }
 0x255   :  { %v1295_v13 = vadd.f32 %v1294_v53, %v1264_v9 }
 0x256   :  { %v1052_v32 = vmax.f32 %v1014_v58, 0.0 }
 0x257   :  { %v1296_v62 = vadd.f32 %v1295_v13, %v1265_v43  ;;  %v795_v24 = vpop.permute.xlu1 %794  ;;  %v1234_v56 = vpop.permute.xlu0 %1233 }
 0x258   :  { %v1019_v18 = vadd.f32 %v2447_v48, %v795_v24  ;;  %v1275_v21 = vmul.f32 %v1234_v56, %v1051_v8 }
 0x259   :  { %v1297_v14 = vadd.f32 %v1296_v62, %v1266_v63 }
 0x25a   :  { %v1053_v59 = vmax.f32 %v1019_v18, 0.0 }
 0x25b   :  { %v1298_v15 = vadd.f32 %v1297_v14, %v1267_v29  ;;  %v1239_v7 = vpop.permute.xlu1 %1238  ;;  %v1244_v6 = vpop.permute.xlu0 %1243 }
 0x25c   :  { %v1276_v1 = vmul.f32 %v1239_v7, %v1052_v32  ;;  %v1277_v25 = vmul.f32 %v1244_v6, %v1053_v59 }
 0x25d   :  { %v1299_v36 = vadd.f32 %v1298_v15, %v1268_v33 }
 0x25f   :  { %v1300_v54 = vadd.f32 %v1299_v36, %v1269_v26 }
 0x261   :  { %v1301_v34 = vadd.f32 %v1300_v54, %v1270_v30 }
 0x263   :  { %v1302_v27 = vadd.f32 %v1301_v34, %v1271_v22 }
 0x265   :  { %v1303_v49 = vadd.f32 %v1302_v27, %v1272_v0 }
 0x267   :  { %v1304_v55 = vadd.f32 %v1303_v49, %v1273_v37 }
 0x269   :  { %v1305_v61 = vadd.f32 %v1304_v55, %v1274_v35 }
 0x26b   :  { %v1306_v5 = vadd.f32 %v1305_v61, %v1275_v21 }
 0x26d   :  { %v1307_v42 = vadd.f32 %v1306_v5, %v1276_v1 }
 0x26f   :  { %v1308_v52 = vadd.f32 %v1307_v42, %v1277_v25 }
 0x271   :  { %v1309_v51 = vrot.slane %v1308_v52, 4 }
 0x273   :  { %v1310_v60 = vadd.f32 %v1309_v51, %v1308_v52 }
 0x275   :  { %v1311_v9 = vrot.slane %v1310_v60, 2 }
 0x277   :  { %v1312_v12 = vadd.f32 %v1311_v9, %v1310_v60 }
 0x279   :  { %v1313_v48 = vrot.slane %v1312_v12, 1 }
 0x27b   :  { %v1314_v53 = vadd.f32 %v1313_v48, %v1312_v12 }
 0x27d   :  { %v1317_v10 = vadd.f32 %v1316_v46, %v1314_v53 }
 0x27f   :  { %1318 = vst [vmem:[#allocation3] sm:$0x1] %v1317_v10 }
 0x280   :  { %1553 = shalt.err (!%p1550_p4)
}
 0x281   :  { %s1554_s30 = scalar_lea.hbm %s2513_s7, 16 }
 0x282   :  { %p1555_p5 = scmp.ne.s32.totalorder %s2513_s7, %s1554_s30  ;;  %p1558_p6 = scmp.lt.u32.totalorder %s1554_s30, %s2513_s7 }
 0x284   :  { %p1560_p7 = pnand %p1558_p6, %p1555_p5 }
 0x286   :  { %1563 = shalt.err (!%p1560_p7)
}
 0x287   :  { %1328 = dma.vmem_to_hbm [thread:$0]  %s1326_s26, 16, %s2513_s7, [#allocation4]  }
 0x288   :  { %1564 = dma.done.wait [#allocation4], 16  }
 0x289   :  { %1565 = vsyncadd [#allocation4], 4294967280 }
 0x28a   :  { %1332 = vsyncpa [#allocation4], 1 }

</bundles_post_ra>
